<compile_context>
chip_gen: v7x
topology: tpu7x:2x2x1
jax: 0.10.0
libtpu: 0.0.40
codegen_flags: <defaults>
</compile_context>

<pallas_src>
import functools
import math

import jax
import jax.numpy as jnp
from jax.experimental import pallas as pl
from jax.experimental.pallas import tpu as pltpu


def _round_up(x: int, m: int) -> int:
    return (x + m - 1) // m * m


def _cdiv(a: int, b: int) -> int:
    return -(-a // b)


# ----------------------------- Pallas kernel ------------------------------ #
def _mlp_fused_kernel(x_ref, *rest, num_layers: int, sigmoid_output: bool):
    """Fused MLP: rest = (w0, b0, w1, b1, ..., o_ref)."""
    o_ref = rest[-1]
    wb_refs = rest[:-1]

    h = x_ref[...]  # (tm, K0p), compute dtype (bf16 or f32)
    for i in range(num_layers):  # static unroll over layers
        w = wb_refs[2 * i][...]        # (Kp, Np), compute dtype
        b = wb_refs[2 * i + 1][...]    # (1, Np), f32
        y = jnp.dot(h.astype(w.dtype), w, preferred_element_type=jnp.float32)
        y = y + b.astype(jnp.float32)  # bias + activation math kept in f32
        if i < num_layers - 1:
            y = jnp.maximum(y, 0.0)
        h = y                          # f32 intermediate, stays in vregs/VMEM
    if sigmoid_output:
        h = jax.nn.sigmoid(h)
    o_ref[...] = h.astype(o_ref.dtype)


# ------------------------- one-time param prep ----------------------------- #
def prepare_mlp_params(params, compute_dtype=jnp.bfloat16):
    """Pad weights/biases to lane-dense (128-multiple) shapes ONCE.

    params: list of (w:(in,out), b:(1,out)).  Returns (padded_params, meta).
    Fast path: when a dim is already a multiple of 128 (e.g. SAM's 256-dim
    layers), no copy is made beyond the dtype cast.
    """
    dims = [params[0][0].shape[0]] + [w.shape[1] for (w, _) in params]
    dims_p = [_round_up(d, 128) for d in dims]

    padded = []
    for li, (w, b) in enumerate(params):
        Kp, Np = dims_p[li], dims_p[li + 1]
        wc = w.astype(compute_dtype)
        if wc.shape != (Kp, Np):
            wc = (jnp.zeros((Kp, Np), compute_dtype)
                  .at[:w.shape[0], :w.shape[1]].set(wc))
        bc = b.reshape(1, -1).astype(jnp.float32)
        if bc.shape != (1, Np):
            bc = jnp.zeros((1, Np), jnp.float32).at[:, :b.shape[-1]].set(bc)
        padded.append((wc, bc))

    meta = {"dims": tuple(dims), "dims_p": tuple(dims_p),
            "compute_dtype": compute_dtype}
    return padded, meta


# ------------------------------ MLP wrapper -------------------------------- #
def mlp_forward(x, padded_params, meta, sigmoid_output: bool = False, *,
                tm_max: int = 128):
    """Matches MLP.forward: ReLU between layers, optional sigmoid at the end.

    x: (..., input_dim).  padded_params/meta come from prepare_mlp_params.
    """
    orig_shape = x.shape
    out_dtype = x.dtype
    dims, dims_p = meta["dims"], meta["dims_p"]
    compute_dtype = meta["compute_dtype"]
    num_layers = len(padded_params)
    K0, K0p = dims[0], dims_p[0]
    output_dim, Np_last = dims[-1], dims_p[-1]
    assert orig_shape[-1] == K0, (orig_shape, K0)

    x2d = x.reshape(-1, K0)
    M = x2d.shape[0]
    if M == 0:  # degenerate: no rows
        return jnp.zeros((*orig_shape[:-1], output_dim), out_dtype)

    # Row tiling: minimize M-padding waste, cap tm at tm_max (v5e spill guard),
    # and M > tm_max automatically gives >=2 parallel grid steps (v7x 2 TCs).
    num_m_tiles = _cdiv(M, tm_max)
    tm = _round_up(_cdiv(M, num_m_tiles), 16)
    Mp = tm * num_m_tiles

    # Per-call work on x only (weights were padded once at init).
    xc = x2d.astype(compute_dtype)
    if (M, K0) != (Mp, K0p):
        xc = jnp.zeros((Mp, K0p), compute_dtype).at[:M, :K0].set(xc)

    in_specs = [pl.BlockSpec((tm, K0p), lambda i: (i, 0))]  # double-buffered
    wb_inputs = []
    for li, (wp, bp) in enumerate(padded_params):
        Kp, Np = dims_p[li], dims_p[li + 1]
        wb_inputs += [wp, bp]
        # Grid-invariant weights/biases: single-buffered, VMEM-resident.
        in_specs += [
            pl.BlockSpec((Kp, Np), lambda i: (0, 0),
                         pipeline_mode=pl.Buffered(1)),
            pl.BlockSpec((1, Np), lambda i: (0, 0),
                         pipeline_mode=pl.Buffered(1)),
        ]

    # Explicit VMEM budget: resident weights/biases (1 buffer) + streamed
    # x/out tiles (2 buffers each).  Cap below the v7x 64 MiB physical VMEM.
    cbytes = jnp.dtype(compute_dtype).itemsize
    obytes = jnp.dtype(out_dtype).itemsize
    resident = sum(int(w.size) * cbytes + int(b.size) * 4
                   for w, b in padded_params)
    streamed = 2 * tm * K0p * cbytes + 2 * tm * Np_last * obytes
    vmem_limit = int(min(max(2 * (resident + streamed), 32 << 20), 48 << 20))

    out = pl.pallas_call(
        functools.partial(_mlp_fused_kernel, num_layers=num_layers,
                          sigmoid_output=sigmoid_output),
        out_shape=jax.ShapeDtypeStruct((Mp, Np_last), out_dtype),
        grid=(num_m_tiles,),
        in_specs=in_specs,
        out_specs=pl.BlockSpec((tm, Np_last), lambda i: (i, 0)),
        compiler_params=pltpu.CompilerParams(
            dimension_semantics=("parallel",),
            vmem_limit_bytes=vmem_limit,
        ),
    )(xc, *wb_inputs)

    out = out[:M, :output_dim]  # drop padded rows/lanes (never expose them)
    return out.reshape(*orig_shape[:-1], output_dim)


# ------------------------------ init / ref --------------------------------- #
def init_mlp_params(key, input_dim, hidden_dim, output_dim, num_layers,
                    dtype=jnp.float32):
    """Deterministic init matching nn.Linear shapes (stored as (in, out))."""
    h = [hidden_dim] * (num_layers - 1)
    dims = list(zip([input_dim] + h, h + [output_dim]))
    params = []
    for (n_in, n_out) in dims:
        key, kw, kb = jax.random.split(key, 3)
        bound = 1.0 / math.sqrt(n_in)  # same scale as torch.nn.Linear default
        w = jax.random.uniform(kw, (n_in, n_out), dtype, -bound, bound)
        b = jax.random.uniform(kb, (1, n_out), dtype, -bound, bound)
        params.append((w, b))
    return params


def mlp_reference(x, params, sigmoid_output: bool = False):
    num_layers = len(params)
    for i, (w, b) in enumerate(params):
        x = jnp.dot(x, w) + b[0]
        if i < num_layers - 1:
            x = jnp.maximum(x, 0.0)
    if sigmoid_output:
        x = jax.nn.sigmoid(x)
    return x


# --------------------------------- main ------------------------------------ #
if __name__ == "__main__":
    key = jax.random.PRNGKey(0)
    k_x, k_p = jax.random.split(key)

    # Small shapes consistent with the module: tokens (batch, seq, input_dim)
    batch, seq = 2, 8
    input_dim, hidden_dim, output_dim, num_layers = 32, 64, 16, 3
    sigmoid_output = True  # exercise both ReLU and sigmoid paths

    x = jax.random.normal(k_x, (batch, seq, input_dim), dtype=jnp.float32)
    params = init_mlp_params(k_p, input_dim, hidden_dim, output_dim, num_layers)

    ref = mlp_reference(x, params, sigmoid_output=sigmoid_output)

    # bf16 matmul path (default: halves weight/activation DMA, f32 accumulate).
    p_bf16, m_bf16 = prepare_mlp_params(params, jnp.bfloat16)
    out_bf16 = jax.block_until_ready(
        mlp_forward(x, p_bf16, m_bf16, sigmoid_output=sigmoid_output))
    assert out_bf16.shape == (batch, seq, output_dim), out_bf16.shape
    assert jnp.allclose(out_bf16, ref, atol=5e-2, rtol=5e-2), "bf16 mismatch"

    # f32 matmul path: tight correctness check.
    p_f32, m_f32 = prepare_mlp_params(params, jnp.float32)
    out_f32 = jax.block_until_ready(
        mlp_forward(x, p_f32, m_f32, sigmoid_output=sigmoid_output))
    assert out_f32.shape == (batch, seq, output_dim), out_f32.shape
    assert jnp.allclose(out_f32, ref, atol=1e-5, rtol=1e-5), "f32 mismatch"

    print("KERNEL_OK")
</pallas_src>

<mosaic_0001>
module attributes {stable_mosaic.version = 11 : i64} {
  func.func @_mlp_fused_kernel(%arg0: i32, %arg1: memref<16x128xbf16, #tpu.memory_space<vmem>>, %arg2: memref<128x128xbf16, #tpu.memory_space<vmem>>, %arg3: memref<1x128xf32, #tpu.memory_space<vmem>>, %arg4: memref<128x128xbf16, #tpu.memory_space<vmem>>, %arg5: memref<1x128xf32, #tpu.memory_space<vmem>>, %arg6: memref<128x128xbf16, #tpu.memory_space<vmem>>, %arg7: memref<1x128xf32, #tpu.memory_space<vmem>>, %arg8: memref<16x128xf32, #tpu.memory_space<vmem>>) attributes {dimension_semantics = [#tpu.dimension_semantics<parallel>], iteration_bounds = array<i64: 1>, scalar_prefetch = 0 : i64, scratch_operands = 0 : i64, tpu.core_type = #tpu.core_type<tc>, window_params = [{transform_indices = @transform_0, window_bounds = array<i64: 16, 128>}, {pipeline_mode = #tpu.pipeline_mode<synchronous>, transform_indices = @transform_1, window_bounds = array<i64: 128, 128>}, {pipeline_mode = #tpu.pipeline_mode<synchronous>, transform_indices = @transform_2, window_bounds = array<i64: 1, 128>}, {pipeline_mode = #tpu.pipeline_mode<synchronous>, transform_indices = @transform_3, window_bounds = array<i64: 128, 128>}, {pipeline_mode = #tpu.pipeline_mode<synchronous>, transform_indices = @transform_4, window_bounds = array<i64: 1, 128>}, {pipeline_mode = #tpu.pipeline_mode<synchronous>, transform_indices = @transform_5, window_bounds = array<i64: 128, 128>}, {pipeline_mode = #tpu.pipeline_mode<synchronous>, transform_indices = @transform_6, window_bounds = array<i64: 1, 128>}, {transform_indices = @transform_7, window_bounds = array<i64: 16, 128>}]} {
    %c0 = arith.constant 0 : index
    %c0_0 = arith.constant 0 : index
    %0 = vector.load %arg1[%c0, %c0_0] : memref<16x128xbf16, #tpu.memory_space<vmem>>, vector<16x128xbf16>
    %c0_1 = arith.constant 0 : index
    %c0_2 = arith.constant 0 : index
    %1 = vector.load %arg2[%c0_1, %c0_2] : memref<128x128xbf16, #tpu.memory_space<vmem>>, vector<128x128xbf16>
    %c0_3 = arith.constant 0 : index
    %c0_4 = arith.constant 0 : index
    %2 = vector.load %arg3[%c0_3, %c0_4] : memref<1x128xf32, #tpu.memory_space<vmem>>, vector<1x128xf32>
    %cst = arith.constant dense<0.000000e+00> : vector<16x128xf32>
    %3 = tpu.matmul %0, %1, %cst {dimension_numbers = #tpu.dot_dimension_numbers<[1], [0], [0], [1], [0, 0, 1, 1], [], []>} : vector<16x128xbf16>, vector<128x128xbf16>, vector<16x128xf32> -> vector<16x128xf32>
    %4 = vector.broadcast %2 : vector<1x128xf32> to vector<16x128xf32>
    %5 = arith.addf %3, %4 : vector<16x128xf32>
    %cst_5 = arith.constant 0.000000e+00 : f32
    %6 = vector.broadcast %cst_5 : f32 to vector<16x128xf32>
    %7 = arith.maximumf %5, %6 : vector<16x128xf32>
    %c0_6 = arith.constant 0 : index
    %c0_7 = arith.constant 0 : index
    %8 = vector.load %arg4[%c0_6, %c0_7] : memref<128x128xbf16, #tpu.memory_space<vmem>>, vector<128x128xbf16>
    %c0_8 = arith.constant 0 : index
    %c0_9 = arith.constant 0 : index
    %9 = vector.load %arg5[%c0_8, %c0_9] : memref<1x128xf32, #tpu.memory_space<vmem>>, vector<1x128xf32>
    %10 = arith.truncf %7 : vector<16x128xf32> to vector<16x128xbf16>
    %cst_10 = arith.constant dense<0.000000e+00> : vector<16x128xf32>
    %11 = tpu.matmul %10, %8, %cst_10 {dimension_numbers = #tpu.dot_dimension_numbers<[1], [0], [0], [1], [0, 0, 1, 1], [], []>} : vector<16x128xbf16>, vector<128x128xbf16>, vector<16x128xf32> -> vector<16x128xf32>
    %12 = vector.broadcast %9 : vector<1x128xf32> to vector<16x128xf32>
    %13 = arith.addf %11, %12 : vector<16x128xf32>
    %cst_11 = arith.constant 0.000000e+00 : f32
    %14 = vector.broadcast %cst_11 : f32 to vector<16x128xf32>
    %15 = arith.maximumf %13, %14 : vector<16x128xf32>
    %c0_12 = arith.constant 0 : index
    %c0_13 = arith.constant 0 : index
    %16 = vector.load %arg6[%c0_12, %c0_13] : memref<128x128xbf16, #tpu.memory_space<vmem>>, vector<128x128xbf16>
    %c0_14 = arith.constant 0 : index
    %c0_15 = arith.constant 0 : index
    %17 = vector.load %arg7[%c0_14, %c0_15] : memref<1x128xf32, #tpu.memory_space<vmem>>, vector<1x128xf32>
    %18 = arith.truncf %15 : vector<16x128xf32> to vector<16x128xbf16>
    %cst_16 = arith.constant dense<0.000000e+00> : vector<16x128xf32>
    %19 = tpu.matmul %18, %16, %cst_16 {dimension_numbers = #tpu.dot_dimension_numbers<[1], [0], [0], [1], [0, 0, 1, 1], [], []>} : vector<16x128xbf16>, vector<128x128xbf16>, vector<16x128xf32> -> vector<16x128xf32>
    %20 = vector.broadcast %17 : vector<1x128xf32> to vector<16x128xf32>
    %21 = arith.addf %19, %20 : vector<16x128xf32>
    %22 = arith.negf %21 : vector<16x128xf32>
    %23 = math.exp %22 : vector<16x128xf32>
    %cst_17 = arith.constant 1.000000e+00 : f32
    %24 = vector.broadcast %cst_17 : f32 to vector<16x128xf32>
    %25 = arith.addf %24, %23 : vector<16x128xf32>
    %26 = arith.divf %24, %25 : vector<16x128xf32>
    %c0_18 = arith.constant 0 : index
    %c0_19 = arith.constant 0 : index
    %27 = vector.load %arg8[%c0_18, %c0_19] : memref<16x128xf32, #tpu.memory_space<vmem>>, vector<16x128xf32>
    tpu.vector_store %arg8[%c0_18, %c0_19], %26 {strides = array<i32>} : memref<16x128xf32, #tpu.memory_space<vmem>>, vector<16x128xf32>,
    return
  }
  func.func @transform_0(%arg0: i32) -> (i32, i32) {
    %c0_i32 = arith.constant 0 : i32
    %c0_i32_0 = arith.constant 0 : i32
    return %arg0, %c0_i32 : i32, i32
  }
  func.func @transform_1(%arg0: i32) -> (i32, i32) {
    %c0_i32 = arith.constant 0 : i32
    %c0_i32_0 = arith.constant 0 : i32
    %c0_i32_1 = arith.constant 0 : i32
    return %c0_i32, %c0_i32_0 : i32, i32
  }
  func.func @transform_2(%arg0: i32) -> (i32, i32) {
    %c0_i32 = arith.constant 0 : i32
    %c0_i32_0 = arith.constant 0 : i32
    %c0_i32_1 = arith.constant 0 : i32
    return %c0_i32, %c0_i32_0 : i32, i32
  }
  func.func @transform_3(%arg0: i32) -> (i32, i32) {
    %c0_i32 = arith.constant 0 : i32
    %c0_i32_0 = arith.constant 0 : i32
    %c0_i32_1 = arith.constant 0 : i32
    return %c0_i32, %c0_i32_0 : i32, i32
  }
  func.func @transform_4(%arg0: i32) -> (i32, i32) {
    %c0_i32 = arith.constant 0 : i32
    %c0_i32_0 = arith.constant 0 : i32
    %c0_i32_1 = arith.constant 0 : i32
    return %c0_i32, %c0_i32_0 : i32, i32
  }
  func.func @transform_5(%arg0: i32) -> (i32, i32) {
    %c0_i32 = arith.constant 0 : i32
    %c0_i32_0 = arith.constant 0 : i32
    %c0_i32_1 = arith.constant 0 : i32
    return %c0_i32, %c0_i32_0 : i32, i32
  }
  func.func @transform_6(%arg0: i32) -> (i32, i32) {
    %c0_i32 = arith.constant 0 : i32
    %c0_i32_0 = arith.constant 0 : i32
    %c0_i32_1 = arith.constant 0 : i32
    return %c0_i32, %c0_i32_0 : i32, i32
  }
  func.func @transform_7(%arg0: i32) -> (i32, i32) {
    %c0_i32 = arith.constant 0 : i32
    %c0_i32_0 = arith.constant 0 : i32
    return %arg0, %c0_i32 : i32, i32
  }
}

</mosaic_0001>

<bundles_post_ra>
// kernel: tpu_custom_call.1
= control target key start
LH: loop header
LB: loop body
LE: loop exit
PB: predicated region body
PF: predicated region fallthrough
CT: control target
= control target key end

     0   :  { %12 = vsyncpa [#allocation3], 0  ;;  %s921_s0 = inlined_call_operand.hbm [shape: bf16[16,128], index: 0, kind: input, shape index: {}]   ;;  %s922_s1 = inlined_call_operand.hbm [shape: bf16[128,128], index: 1, kind: input, shape index: {}]   ;;  %s923_s2 = inlined_call_operand.vmem [shape: f32[1,128], index: 2, kind: input, shape index: {}]   ;;  %s924_s3 = inlined_call_operand.hbm [shape: bf16[128,128], index: 3, kind: input, shape index: {}]   ;;  %s925_s4 = inlined_call_operand.vmem [shape: f32[1,128], index: 4, kind: input, shape index: {}]   ;;  %s926_s5 = inlined_call_operand.hbm [shape: bf16[128,128], index: 5, kind: input, shape index: {}]   ;;  %s927_s6 = inlined_call_operand.vmem [shape: f32[1,128], index: 6, kind: input, shape index: {}]   ;;  %s928_s7 = inlined_call_operand.hbm [shape: f32[16,128], index: 7, kind: output, shape index: {}]  }
   0x1   :  { %13 = vsyncpa [#allocation6], 0 }
   0x2   :  { %14 = vsyncpa [#allocation9], 0 }
   0x3   :  { %15 = vsyncpa [#allocation4], 0  ;;  %s745_s24 = smov [#allocation5]   ;;  %s746_s26 = smov [#allocation2]  }
   0x4   :  { %s33_s25 = sshll.u32 %s745_s24, 4  ;;  %s21_s27 = sshll.u32 %s746_s26, 4  ;;  %s34_s25 = int_to_ptr.vmem [resolvable:$true] %s33_s25  ;;  %s796_s27 = int_to_ptr.vmem [resolvable:$true] %s21_s27 }
   0x5   :  { %s627_s30 = scalar_lea.hbm %s922_s1, 1024 }
   0x6   :  { %p628_p0 = scmp.ne.s32.totalorder %s922_s1, %s627_s30  ;;  %p631_p1 = scmp.lt.u32.totalorder %s627_s30, %s922_s1 }
   0x8   :  { %p633_p2 = pnand %p631_p1, %p628_p0 }
   0xa   :  { %636 = shalt.err (!%p633_p2)
}
   0xb   :  { %s637_s12 = scalar_lea.vmem %s34_s25, 1024  ;;  %p642_p4 = scmp.lt.s32.totalorder %s34_s25, %s34_s25 }
   0xc   :  { %p638_p3 = scmp.ne.s32.totalorder %s34_s25, %s637_s12  ;;  %p643_p5 = scmp.lt.s32.totalorder %s637_s12, %s637_s12 }
   0xe   :  { %p644_p6 = por %p643_p5, %p642_p4 }
  0x10   :  { %p645_p7 = pnand %p644_p6, %p638_p3 }
  0x12   :  { %648 = shalt.err (!%p645_p7)
}
  0x13   :  { %s747_s13 = smov 64   ;;  %s748_s14 = smov 4  }
  0x14   :  { %39 = dma.hbm_to_vmem [thread:$0]  %s922_s1, 1024, %s34_s25, [#allocation6], %s747_s13, %s747_s13, %s748_s14  }
  0x15   :  { %s649_s19 = scalar_lea.hbm %s921_s0, 128 }
  0x16   :  { %p650_p8 = scmp.ne.s32.totalorder %s921_s0, %s649_s19  ;;  %p653_p9 = scmp.lt.u32.totalorder %s649_s19, %s921_s0 }
  0x18   :  { %p655_p10 = pnand %p653_p9, %p650_p8 }
  0x1a   :  { %658 = shalt.err (!%p655_p10)
}
  0x1b   :  { %s659_s24 = scalar_lea.vmem %s796_s27, 128  ;;  %p664_p12 = scmp.lt.s32.totalorder %s796_s27, %s796_s27 }
  0x1c   :  { %p660_p11 = scmp.ne.s32.totalorder %s796_s27, %s659_s24  ;;  %p665_p13 = scmp.lt.s32.totalorder %s659_s24, %s659_s24 }
  0x1e   :  { %p666_p0 = por %p665_p13, %p664_p12 }
  0x20   :  { %p667_p1 = pnand %p666_p0, %p660_p11 }
  0x22   :  { %670 = shalt.err (!%p667_p1)
}
  0x23   :  { %27 = dma.hbm_to_vmem [thread:$0]  %s921_s0, 128, %s796_s27, [#allocation3], %s747_s13, %s747_s13, %s748_s14  }
  0x24   :  { %s749_s26 = smov [#allocation7]   ;;  %s750_s29 = smov [#allocation8]  }
  0x25   :  { %s47_s28 = sshll.u32 %s749_s26, 4  ;;  %s61_s30 = sshll.u32 %s750_s29, 4  ;;  %s48_s28 = int_to_ptr.vmem [resolvable:$true] %s47_s28  ;;  %s833_s30 = int_to_ptr.vmem [resolvable:$true] %s61_s30 }
  0x26   :  { %s671_s10 = scalar_lea.hbm %s924_s3, 1024 }
  0x27   :  { %p672_p2 = scmp.ne.s32.totalorder %s924_s3, %s671_s10  ;;  %p675_p3 = scmp.lt.u32.totalorder %s671_s10, %s924_s3 }
  0x29   :  { %p677_p4 = pnand %p675_p3, %p672_p2 }
  0x2b   :  { %680 = shalt.err (!%p677_p4)
}
  0x2c   :  { %s681_s0 = scalar_lea.vmem %s48_s28, 1024  ;;  %p686_p6 = scmp.lt.s32.totalorder %s48_s28, %s48_s28 }
  0x2d   :  { %p682_p5 = scmp.ne.s32.totalorder %s48_s28, %s681_s0  ;;  %p687_p7 = scmp.lt.s32.totalorder %s681_s0, %s681_s0 }
  0x2f   :  { %p688_p8 = por %p687_p7, %p686_p6 }
  0x31   :  { %p689_p9 = pnand %p688_p8, %p682_p5 }
  0x33   :  { %692 = shalt.err (!%p689_p9)
}
  0x34   :  { %53 = dma.hbm_to_vmem [thread:$0]  %s924_s3, 1024, %s48_s28, [#allocation6], %s747_s13, %s747_s13, %s748_s14  }
  0x35   :  { %s693_s20 = scalar_lea.hbm %s926_s5, 1024 }
  0x36   :  { %p694_p10 = scmp.ne.s32.totalorder %s926_s5, %s693_s20  ;;  %p697_p11 = scmp.lt.u32.totalorder %s693_s20, %s926_s5 }
  0x38   :  { %p699_p12 = pnand %p697_p11, %p694_p10 }
  0x3a   :  { %702 = shalt.err (!%p699_p12)
}
  0x3b   :  { %s703_s1 = scalar_lea.vmem %s833_s30, 1024  ;;  %p708_p0 = scmp.lt.s32.totalorder %s833_s30, %s833_s30 }
  0x3c   :  { %p704_p13 = scmp.ne.s32.totalorder %s833_s30, %s703_s1  ;;  %p709_p1 = scmp.lt.s32.totalorder %s703_s1, %s703_s1 }
  0x3e   :  { %p710_p2 = por %p709_p1, %p708_p0 }
  0x40   :  { %p711_p3 = pnand %p710_p2, %p704_p13 }
  0x42   :  { %714 = shalt.err (!%p711_p3)
}
  0x43   :  { %67 = dma.hbm_to_vmem [thread:$0]  %s926_s5, 1024, %s833_s30, [#allocation9], %s747_s13, %s747_s13, %s748_s14  }
  0x44   :  { %737 = dma.done.wait [#allocation3], 128  }
  0x45   :  { %738 = vsyncadd [#allocation3], 4294967168 }
  0x46   :  { %739 = dma.done.wait [#allocation6], 2048  }
  0x47   :  { %740 = vsyncadd [#allocation6], 4294965248 }
  0x48   :  { %741 = dma.done.wait [#allocation9], 1024  }
  0x49   :  { %742 = vsyncadd [#allocation9], 4294966272  ;;  %v751_v0 = vmov 0.0   ;;  %vm752_vm0 = vmmov 0   ;;  %v594_v1 = vld [vmem:[#allocation5] sm:$0xff]   ;;  %v595_v2 = vld [vmem:[#allocation5 + $0x8] sm:$0xff]  }
  0x4a   :  { %523 = vmatprep.subr.bf16.mxu0 %v751_v0  ;;  %539 = vmatprep.mubr.msk.bf16.mxu0 %vm752_vm0, %v751_v0  ;;  %v596_v3 = vld [vmem:[#allocation5 + $0x10] sm:$0xff]   ;;  %v603_v4 = vld [vmem:[#allocation7] sm:$0xff]   ;;  %v597_v5 = vld [vmem:[#allocation5 + $0x18] sm:$0xff]  }
  0x4b   :  { %543 = vmatprep.subr.bf16.mxu1 %v751_v0  ;;  %559 = vmatprep.mubr.msk.bf16.mxu1 %vm752_vm0, %v751_v0  ;;  %v604_v6 = vld [vmem:[#allocation7 + $0x8] sm:$0xff]   ;;  %v598_v7 = vld [vmem:[#allocation5 + $0x20] sm:$0xff]   ;;  %v605_v8 = vld [vmem:[#allocation7 + $0x10] sm:$0xff]  }
  0x4c   :  { %524 = vmatpush3.bf16.msra.mxu0 %v594_v1  ;;  %544 = vmatpush3.bf16.msra.mxu1 %v603_v4  ;;  %v599_v9 = vld [vmem:[#allocation5 + $0x28] sm:$0xff]   ;;  %v606_v10 = vld [vmem:[#allocation7 + $0x18] sm:$0xff]   ;;  %v600_v11 = vld [vmem:[#allocation5 + $0x30] sm:$0xff]  }
  0x4d   :  { %525 = vmatprep.subr.bf16.mxu0 %v751_v0  ;;  %545 = vmatprep.subr.bf16.mxu1 %v751_v0  ;;  %v607_v12 = vld [vmem:[#allocation7 + $0x20] sm:$0xff]   ;;  %v601_v13 = vld [vmem:[#allocation5 + $0x38] sm:$0xff]   ;;  %v608_v14 = vld [vmem:[#allocation7 + $0x28] sm:$0xff]  }
  0x4e   :  { %v602_v15 = vld [vmem:[#allocation2] sm:$0xff]   ;;  %v609_v16 = vld [vmem:[#allocation7 + $0x30] sm:$0xff]   ;;  %v611_v18 = vld [vmem:[#allocation8] sm:$0xff]  }
  0x4f   :  { %v610_v17 = vld [vmem:[#allocation7 + $0x38] sm:$0xff]   ;;  %v612_v19 = vld [vmem:[#allocation8 + $0x8] sm:$0xff]   ;;  %v613_v20 = vld [vmem:[#allocation8 + $0x10] sm:$0xff]  }
  0x50   :  { %526 = vmatpush3.bf16.msra.mxu0 %v595_v2  ;;  %546 = vmatpush3.bf16.msra.mxu1 %v604_v6  ;;  %v614_v21 = vld [vmem:[#allocation8 + $0x18] sm:$0xff]   ;;  %v615_v22 = vld [vmem:[#allocation8 + $0x20] sm:$0xff]   ;;  %v616_v23 = vld [vmem:[#allocation8 + $0x28] sm:$0xff]  }
  0x51   :  { %527 = vmatprep.subr.bf16.mxu0 %v751_v0  ;;  %547 = vmatprep.subr.bf16.mxu1 %v751_v0  ;;  %v466_v24 = vld [vmem:[%s923_s2] ss:$0 sm:$0xff]  ;;  %v617_v34 = vld [vmem:[#allocation8 + $0x30] sm:$0xff]  }
  0x52   :  { %v618_v35 = vld [vmem:[#allocation8 + $0x38] sm:$0xff]  }
  0x53   :  { %v476_v36 = vld [vmem:[%s925_s4] ss:$0 sm:$0xff]  ;;  %s753_s4 = smov [#allocation10]  }
  0x54   :  { %528 = vmatpush3.bf16.msra.mxu0 %v596_v3  ;;  %548 = vmatpush3.bf16.msra.mxu1 %v605_v8  ;;  %v485_v46 = vld [vmem:[%s927_s6] ss:$0 sm:$0xff]  ;;  %s452_s29 = sshll.u32 %s753_s4, 4  ;;  %s453_s29 = int_to_ptr.vmem [resolvable:$true] %s452_s29 }
  0x55   :  { %529 = vmatprep.subr.bf16.mxu0 %v751_v0  ;;  %549 = vmatprep.subr.bf16.mxu1 %v751_v0  ;;  %s715_s6 = scalar_lea.vmem %s453_s29, 256  ;;  %p720_p5 = scmp.lt.s32.totalorder %s453_s29, %s453_s29 }
  0x56   :  { %p716_p4 = scmp.ne.s32.totalorder %s453_s29, %s715_s6  ;;  %p721_p6 = scmp.lt.s32.totalorder %s715_s6, %s715_s6 }
  0x58   :  { %530 = vmatpush3.bf16.msra.mxu0 %v597_v5  ;;  %550 = vmatpush3.bf16.msra.mxu1 %v606_v10  ;;  %p722_p7 = por %p721_p6, %p720_p5 }
  0x59   :  { %531 = vmatprep.subr.bf16.mxu0 %v751_v0  ;;  %551 = vmatprep.subr.bf16.mxu1 %v751_v0 }
  0x5a   :  { %p723_p8 = pnand %p722_p7, %p716_p4 }
  0x5c   :  { %532 = vmatpush3.bf16.msra.mxu0 %v598_v7  ;;  %552 = vmatpush3.bf16.msra.mxu1 %v607_v12 }
  0x5d   :  { %533 = vmatprep.subr.bf16.mxu0 %v751_v0  ;;  %553 = vmatprep.subr.bf16.mxu1 %v751_v0 }
  0x60   :  { %534 = vmatpush3.bf16.msra.mxu0 %v599_v9  ;;  %554 = vmatpush3.bf16.msra.mxu1 %v608_v14 }
  0x61   :  { %535 = vmatprep.subr.bf16.mxu0 %v751_v0  ;;  %555 = vmatprep.subr.bf16.mxu1 %v751_v0 }
  0x64   :  { %536 = vmatpush3.bf16.msra.mxu0 %v600_v11  ;;  %556 = vmatpush3.bf16.msra.mxu1 %v609_v16 }
  0x65   :  { %537 = vmatprep.subr.bf16.mxu0 %v751_v0  ;;  %557 = vmatprep.subr.bf16.mxu1 %v751_v0 }
  0x68   :  { %538 = vmatpush3.bf16.msra.mxu0 %v601_v13  ;;  %558 = vmatpush3.bf16.msra.mxu1 %v610_v17 }
  0x69   :  { %563 = vmatprep.subr.bf16.mxu0 %v751_v0 }
  0x6b   :  { %540 = vmatmul.mubr.bf16.vlgmr.msra.gmra.mrb[0].mxu0 %v602_v15 }
  0x6c   :  { %579 = vmatprep.mubr.msk.bf16.mxu0 %vm752_vm0, %v751_v0  ;;  %564 = vmatpush3.bf16.msra.mxu0 %v611_v18 }
  0x6d   :  { %565 = vmatprep.subr.bf16.mxu0 %v751_v0 }
  0x70   :  { %566 = vmatpush3.bf16.msra.mxu0 %v612_v19 }
  0x71   :  { %567 = vmatprep.subr.bf16.mxu0 %v751_v0 }
  0x74   :  { %568 = vmatpush3.bf16.msra.mxu0 %v613_v20 }
  0x75   :  { %569 = vmatprep.subr.bf16.mxu0 %v751_v0 }
  0x78   :  { %570 = vmatpush3.bf16.msra.mxu0 %v614_v21 }
  0x79   :  { %571 = vmatprep.subr.bf16.mxu0 %v751_v0 }
  0x7c   :  { %572 = vmatpush3.bf16.msra.mxu0 %v615_v22 }
  0x7d   :  { %573 = vmatprep.subr.bf16.mxu0 %v751_v0 }
  0x80   :  { %574 = vmatpush3.bf16.msra.mxu0 %v616_v23 }
  0x81   :  { %575 = vmatprep.subr.bf16.mxu0 %v751_v0 }
  0x84   :  { %576 = vmatpush3.bf16.msra.mxu0 %v617_v34 }
  0x85   :  { %577 = vmatprep.subr.bf16.mxu0 %v751_v0 }
  0x88   :  { %578 = vmatpush3.bf16.msra.mxu0 %v618_v35 }
 0x13e   :  { %v196_v25 = vpop.f32.mrb[0].mxu0 }
 0x13f   :  { %v197_v26 = vadd.f32 %v466_v24, %v196_v25  ;;  %v541_v27 = vpop.f32.mrb[1].mxu0 }
 0x140   :  { %v199_v28 = vpop.f32.mrb[2].mxu0 }
 0x141   :  { %v200_v29 = vadd.f32 %v466_v24, %v199_v28  ;;  %v542_v30 = vpop.f32.mrb[3].mxu0  ;;  %v203_v31 = vmax.f32 %v197_v26, 0.0 }
 0x143   :  { %v204_v32 = vmax.f32 %v200_v29, 0.0 }
 0x145   :  { %v222_v33 = vpack.c.bf16 %v204_v32, %v203_v31 }
 0x147   :  { %560 = vmatmul.mubr.bf16.vlgmr.msra.gmra.mrb[0].mxu1 %v222_v33 }
 0x21a   :  { %v311_v37 = vpop.f32.mrb[0].mxu1 }
 0x21b   :  { %v312_v38 = vadd.f32 %v476_v36, %v311_v37  ;;  %v561_v39 = vpop.f32.mrb[1].mxu1 }
 0x21c   :  { %v314_v40 = vpop.f32.mrb[2].mxu1 }
 0x21d   :  { %v315_v41 = vadd.f32 %v476_v36, %v314_v40  ;;  %v562_v42 = vpop.f32.mrb[3].mxu1  ;;  %v318_v43 = vmax.f32 %v312_v38, 0.0 }
 0x21f   :  { %v319_v44 = vmax.f32 %v315_v41, 0.0 }
 0x221   :  { %v337_v45 = vpack.c.bf16 %v319_v44, %v318_v43 }
 0x223   :  { %580 = vmatmul.mubr.bf16.vlgmr.msra.gmra.mrb[4].mxu0 %v337_v45 }
 0x2f6   :  { %v426_v47 = vpop.f32.mrb[4].mxu0 }
 0x2f7   :  { %v427_v48 = vadd.f32 %v485_v46, %v426_v47  ;;  %v581_v49 = vpop.f32.mrb[5].mxu0 }
 0x2f8   :  { %v429_v50 = vpop.f32.mrb[6].mxu0 }
 0x2f9   :  { %v494_v51 = vmul.f32 -1.442695, %v427_v48  ;;  %v430_v52 = vadd.f32 %v485_v46, %v429_v50  ;;  %v582_v53 = vpop.f32.mrb[7].mxu0 }
 0x2fb   :  { %619 = vpow2.f32 %v494_v51  ;;  %v495_v54 = vmul.f32 -1.442695, %v430_v52 }
 0x2fd   :  { %621 = vpow2.f32 %v495_v54 }
 0x305   :  { %v620_v55 = vpop.eup %619 }
 0x306   :  { %v439_v56 = vadd.f32 1.0, %v620_v55 }
 0x307   :  { %v622_v57 = vpop.eup %621 }
 0x308   :  { %623 = vrcp.f32 %v439_v56  ;;  %v440_v58 = vadd.f32 1.0, %v622_v57 }
 0x30a   :  { %625 = vrcp.f32 %v440_v58 }
 0x312   :  { %v624_v59 = vpop.eup %623 }
 0x313   :  { %445 = vst [vmem:[#allocation10] sm:$0xff] %v624_v59 }
 0x314   :  { %v626_v60 = vpop.eup %625 }
 0x315   :  { %446 = vst [vmem:[#allocation10 + $0x8] sm:$0xff] %v626_v60 }
 0x316   :  { %726 = shalt.err (!%p723_p8)
}
 0x317   :  { %s727_s9 = scalar_lea.hbm %s928_s7, 256 }
 0x318   :  { %p728_p9 = scmp.ne.s32.totalorder %s928_s7, %s727_s9  ;;  %p731_p10 = scmp.lt.u32.totalorder %s727_s9, %s928_s7 }
 0x31a   :  { %p733_p11 = pnand %p731_p10, %p728_p9 }
 0x31c   :  { %736 = shalt.err (!%p733_p11)
}
 0x31d   :  { %s754_s16 = smov 128   ;;  %s755_s0 = smov 8  }
 0x31e   :  { %458 = dma.vmem_to_hbm [thread:$0]  %s453_s29, 256, %s928_s7, [#allocation4], %s754_s16, %s754_s16, %s755_s0  }
 0x31f   :  { %743 = dma.done.wait [#allocation4], 256  }
 0x320   :  { %744 = vsyncadd [#allocation4], 4294967040 }
 0x321   :  { %462 = vsyncpa [#allocation3], 1 }
 0x322   :  { %463 = vsyncpa [#allocation6], 1 }
 0x323   :  { %464 = vsyncpa [#allocation9], 1 }
 0x324   :  { %465 = vsyncpa [#allocation4], 1 }

</bundles_post_ra>
